<compile_context>
chip_gen: v7x
topology: tpu7x:2x2x1
jax: 0.10.0
libtpu: 0.0.40
codegen_flags: <defaults>
</compile_context>

<pallas_src>
import math

import jax
import jax.numpy as jnp
from jax.experimental import pallas as pl
from jax.experimental.pallas import tpu as pltpu


# ---------------------------------------------------------------------------
# Kernel 1: row-tiled linear  y = x @ w + b  (bf16 operands, f32 accumulate)
#   Used for the fused QKV projection (Eout = 3E) and the cross-attn fallback.
# ---------------------------------------------------------------------------
def _linear_kernel(x_ref, w_ref, b_ref, o_ref):
    # x: [tm, Ein] f32, w: [Ein, Eout] bf16, b: [1, Eout] f32 -> o: [tm, Eout] bf16
    acc = jnp.dot(x_ref[...].astype(jnp.bfloat16), w_ref[...],
                  preferred_element_type=jnp.float32)
    o_ref[...] = (acc + b_ref[...]).astype(o_ref.dtype)


def pallas_linear(x2d, w_bf16, b_f32, *, tm=256, out_dtype=jnp.bfloat16):
    """y = x2d @ w + b, tiled over rows so HBM DMA overlaps MXU work."""
    M, Ein = x2d.shape
    Eout = w_bf16.shape[1]
    tm = min(tm, M)
    return pl.pallas_call(
        _linear_kernel,
        out_shape=jax.ShapeDtypeStruct((M, Eout), out_dtype),
        grid=(pl.cdiv(M, tm),),
        in_specs=[
            pl.BlockSpec((tm, Ein), lambda i: (i, 0)),
            pl.BlockSpec((Ein, Eout), lambda i: (0, 0)),  # weights stay resident
            pl.BlockSpec((1, Eout), lambda i: (0, 0)),    # bias stays resident
        ],
        out_specs=pl.BlockSpec((tm, Eout), lambda i: (i, 0)),
        compiler_params=pltpu.CompilerParams(
            dimension_semantics=("parallel",)),
    )(x2d, w_bf16, b_f32.reshape(1, Eout))


# ---------------------------------------------------------------------------
# Kernel 2: multi-head attention + fused output projection
#   q: [B, H, Sq, d_k] bf16 (pre-scaled by 1/sqrt(d_k) at projection time)
#   k, v: [B, H, Skv, d_k] bf16 ;  wo: [E, E] bf16 ; bo: [E] f32
#   out: [B, Sq, E] f32
#   grid = (B, Sq // tq), both axes "parallel".
# ---------------------------------------------------------------------------
def _attn_outproj_kernel(q_ref, k_ref, v_ref, wo_ref, bo_ref, o_ref, ctx_ref):
    # q_ref: [H, tq, d_k] ; k_ref/v_ref: [H, Skv, d_k] ; wo: [E, E] ; bo: [1, E]
    # o_ref: [tq, E] f32 ; ctx_ref scratch: [tq, E] bf16
    H, _, d_k = q_ref.shape
    for h in range(H):  # static unroll; each iter ends in a ref store (bounded live ranges)
        q_h = q_ref[h]                                   # [tq, d_k] bf16, contiguous
        k_h = k_ref[h]                                   # [Skv, d_k] bf16
        v_h = v_ref[h]                                   # [Skv, d_k] bf16
        # scores = q_h @ k_h^T (contract minor axes; no materialized transpose).
        s = jax.lax.dot_general(
            q_h, k_h,
            dimension_numbers=(((1,), (1,)), ((), ())),
            preferred_element_type=jnp.float32)          # [tq, Skv] f32
        # numerically-stable softmax in f32; normalization deferred past the PV matmul
        m = jnp.max(s, axis=-1, keepdims=True)
        e = jnp.exp(s - m)                               # [tq, Skv] f32
        r = pl.reciprocal(jnp.sum(e, axis=-1, keepdims=True), approx=True)  # EUP
        ctx = jnp.dot(e.astype(v_h.dtype), v_h,
                      preferred_element_type=jnp.float32) * r               # [tq, d_k] f32
        # stage this head's context at its lane offset (static slice)
        ctx_ref[:, h * d_k:(h + 1) * d_k] = ctx.astype(ctx_ref.dtype)
    # single full-depth (K = E) output projection + bias
    acc = jnp.dot(ctx_ref[...], wo_ref[...], preferred_element_type=jnp.float32)
    o_ref[...] = (acc + bo_ref[...]).astype(o_ref.dtype)


def _pick_q_tile(s):
    for t in (256, 128):
        if s >= t and s % t == 0:
            return t
    return s


def pallas_attention_outproj(q4, k4, v4, wo_bf16, bo_f32):
    """q4: [B,H,Sq,d_k], k4/v4: [B,H,Skv,d_k] (bf16) -> [B, Sq, E] f32."""
    B, H, Sq, d_k = q4.shape
    Skv = k4.shape[2]
    E = H * d_k
    tq = _pick_q_tile(Sq)
    return pl.pallas_call(
        _attn_outproj_kernel,
        out_shape=jax.ShapeDtypeStruct((B, Sq, E), jnp.float32),
        grid=(B, Sq // tq),
        in_specs=[
            pl.BlockSpec((None, H, tq, d_k), lambda b, i: (b, 0, i, 0)),
            pl.BlockSpec((None, H, Skv, d_k), lambda b, i: (b, 0, 0, 0)),  # resident over i
            pl.BlockSpec((None, H, Skv, d_k), lambda b, i: (b, 0, 0, 0)),  # resident over i
            pl.BlockSpec((E, E), lambda b, i: (0, 0)),                     # Wo resident
            pl.BlockSpec((1, E), lambda b, i: (0, 0)),                     # bo resident
        ],
        out_specs=pl.BlockSpec((None, tq, E), lambda b, i: (b, i, 0)),
        scratch_shapes=[pltpu.VMEM((tq, E), jnp.bfloat16)],
        compiler_params=pltpu.CompilerParams(
            dimension_semantics=("parallel", "parallel")),
    )(q4, k4, v4, wo_bf16, bo_f32.reshape(1, E))


# ---------------------------------------------------------------------------
# Parameter init / one-time preparation (fused + bf16 weights, scale folded in)
# ---------------------------------------------------------------------------
def init_mha_params(key, embed_dim, dtype=jnp.float32):
    """Deterministic init for the 4 Linear(embed_dim, embed_dim) layers."""
    params = {}
    bound = 1.0 / math.sqrt(embed_dim)
    names = ("q", "k", "v", "o")
    keys = jax.random.split(key, 2 * len(names))
    for i, n in enumerate(names):
        params[f"w{n}"] = jax.random.uniform(
            keys[2 * i], (embed_dim, embed_dim), dtype, -bound, bound)
        params[f"b{n}"] = jax.random.uniform(
            keys[2 * i + 1], (embed_dim,), dtype, -bound, bound)
    return params


def prepare_mha_params(params, n_heads):
    """One-time packing: fused QKV weight/bias (q pre-scaled), bf16 MXU weights."""
    E = params["wq"].shape[0]
    d_k = E // n_heads
    scale = 1.0 / math.sqrt(d_k)
    w_qkv = jnp.concatenate(
        [params["wq"] * scale, params["wk"], params["wv"]], axis=1)
    b_qkv = jnp.concatenate(
        [params["bq"] * scale, params["bk"], params["bv"]], axis=0)
    return {
        "w_qkv": w_qkv.astype(jnp.bfloat16),
        "b_qkv": b_qkv.astype(jnp.float32),
        "wq": (params["wq"] * scale).astype(jnp.bfloat16),
        "bq": (params["bq"] * scale).astype(jnp.float32),
        "wk": params["wk"].astype(jnp.bfloat16), "bk": params["bk"].astype(jnp.float32),
        "wv": params["wv"].astype(jnp.bfloat16), "bv": params["bv"].astype(jnp.float32),
        "wo": params["wo"].astype(jnp.bfloat16), "bo": params["bo"].astype(jnp.float32),
    }


# ---------------------------------------------------------------------------
# Module forward (plain-JAX glue: projection, head-major relayout, attention)
# ---------------------------------------------------------------------------
def multi_headed_attention(prepared, query, key, value, n_heads, mask=None):
    """Forward of MultiHeadedAttention. query: [B,Sq,E]; key/value: [B,Skv,E]."""
    assert mask is None  # TODO(synk): additive attention-mask support
    B, Sq, E = query.shape
    d_k = E // n_heads

    if (query is key) and (query is value):
        # Self-attention fast path (identity check — documented perf-only gate):
        # one fused [B*Sq, E] @ [E, 3E] matmul reads the activations once.
        qkv2d = pallas_linear(query.reshape(B * Sq, E),
                              prepared["w_qkv"], prepared["b_qkv"])
        # bf16 head-major relayout (single fused XLA transpose of the bf16 slab).
        qkv = qkv2d.reshape(B, Sq, 3, n_heads, d_k).transpose(2, 0, 3, 1, 4)
        q4, k4, v4 = qkv[0], qkv[1], qkv[2]
    else:
        # Cross-attention fallback: three tiled linears, no concatenation,
        # KV sequence length taken from key/value's own shapes.
        def proj(x, w, b):
            bx, sx, _ = x.shape
            y = pallas_linear(x.reshape(bx * sx, E), w, b)
            return y.reshape(bx, sx, n_heads, d_k).transpose(0, 2, 1, 3)
        q4 = proj(query, prepared["wq"], prepared["bq"])
        k4 = proj(key, prepared["wk"], prepared["bk"])
        v4 = proj(value, prepared["wv"], prepared["bv"])

    return pallas_attention_outproj(q4, k4, v4, prepared["wo"], prepared["bo"])


# ---------------------------------------------------------------------------
# Pure-JAX f32 reference (numerical sanity check)
# ---------------------------------------------------------------------------
def reference_mha(params, query, key, value, n_heads):
    B, Sq, E = query.shape
    d_k = E // n_heads

    def lin(x, w, b):
        return x @ w + b

    def split(x):
        bx, sx, _ = x.shape
        return x.reshape(bx, sx, n_heads, d_k).transpose(0, 2, 1, 3)

    q = split(lin(query, params["wq"], params["bq"]))
    k = split(lin(key, params["wk"], params["bk"]))
    v = split(lin(value, params["wv"], params["bv"]))
    s = jnp.einsum("bhqd,bhkd->bhqk", q, k) / math.sqrt(d_k)
    p = jax.nn.softmax(s, axis=-1)
    ctx = jnp.einsum("bhqk,bhkd->bhqd", p, v)
    ctx = ctx.transpose(0, 2, 1, 3).reshape(B, Sq, E)
    return lin(ctx, params["wo"], params["bo"])


# ---------------------------------------------------------------------------
# Example run
# ---------------------------------------------------------------------------
if __name__ == "__main__":
    B, S, E, H = 2, 8, 32, 4

    root = jax.random.PRNGKey(0)
    kp, kx, ky = jax.random.split(root, 3)
    params = init_mha_params(kp, E)
    prepared = prepare_mha_params(params, H)
    x = jax.random.normal(kx, (B, S, E), jnp.float32)

    # Self-attention (fused-QKV path), as in BERT encoder usage.
    out = multi_headed_attention(prepared, x, x, x, n_heads=H)
    out = jax.block_until_ready(out)
    assert out.shape == (B, S, E) and out.dtype == jnp.float32
    ref = reference_mha(params, x, x, x, n_heads=H)
    err = float(jnp.max(jnp.abs(out - ref)))
    # bf16 MXU operands + approx reciprocal => ~1e-3-level relative error
    assert err < 5e-2, f"self-attention max abs error too large: {err}"

    # Cross-attention fallback with a different KV sequence length.
    y = jax.random.normal(ky, (B, 16, E), jnp.float32)
    out_x = multi_headed_attention(prepared, x, y, y, n_heads=H)
    out_x = jax.block_until_ready(out_x)
    assert out_x.shape == (B, S, E)
    ref_x = reference_mha(params, x, y, y, n_heads=H)
    err_x = float(jnp.max(jnp.abs(out_x - ref_x)))
    assert err_x < 5e-2, f"cross-attention max abs error too large: {err_x}"

    print("KERNEL_OK")
</pallas_src>

<mosaic_0001>
module attributes {stable_mosaic.version = 11 : i64} {
  func.func @_linear_kernel(%arg0: i32, %arg1: memref<16x32xf32, #tpu.memory_space<vmem>>, %arg2: memref<32x96xbf16, #tpu.memory_space<vmem>>, %arg3: memref<1x96xf32, #tpu.memory_space<vmem>>, %arg4: memref<16x96xbf16, #tpu.memory_space<vmem>>) attributes {dimension_semantics = [#tpu.dimension_semantics<parallel>], iteration_bounds = array<i64: 1>, scalar_prefetch = 0 : i64, scratch_operands = 0 : i64, tpu.core_type = #tpu.core_type<tc>, window_params = [{transform_indices = @transform_0, window_bounds = array<i64: 16, 32>}, {pipeline_mode = #tpu.pipeline_mode<synchronous>, transform_indices = @transform_1, window_bounds = array<i64: 32, 96>}, {pipeline_mode = #tpu.pipeline_mode<synchronous>, transform_indices = @transform_2, window_bounds = array<i64: 1, 96>}, {transform_indices = @transform_3, window_bounds = array<i64: 16, 96>}]} {
    %c0 = arith.constant 0 : index
    %c0_0 = arith.constant 0 : index
    %0 = vector.load %arg1[%c0, %c0_0] : memref<16x32xf32, #tpu.memory_space<vmem>>, vector<16x32xf32>
    %1 = arith.truncf %0 : vector<16x32xf32> to vector<16x32xbf16>
    %c0_1 = arith.constant 0 : index
    %c0_2 = arith.constant 0 : index
    %2 = vector.load %arg2[%c0_1, %c0_2] : memref<32x96xbf16, #tpu.memory_space<vmem>>, vector<32x96xbf16>
    %cst = arith.constant dense<0.000000e+00> : vector<16x96xf32>
    %3 = tpu.matmul %1, %2, %cst {dimension_numbers = #tpu.dot_dimension_numbers<[1], [0], [0], [1], [0, 0, 1, 1], [], []>} : vector<16x32xbf16>, vector<32x96xbf16>, vector<16x96xf32> -> vector<16x96xf32>
    %c0_3 = arith.constant 0 : index
    %c0_4 = arith.constant 0 : index
    %4 = vector.load %arg3[%c0_3, %c0_4] : memref<1x96xf32, #tpu.memory_space<vmem>>, vector<1x96xf32>
    %5 = vector.broadcast %4 : vector<1x96xf32> to vector<16x96xf32>
    %6 = arith.addf %3, %5 : vector<16x96xf32>
    %7 = arith.truncf %6 : vector<16x96xf32> to vector<16x96xbf16>
    %c0_5 = arith.constant 0 : index
    %c0_6 = arith.constant 0 : index
    %8 = vector.load %arg4[%c0_5, %c0_6] : memref<16x96xbf16, #tpu.memory_space<vmem>>, vector<16x96xbf16>
    tpu.vector_store %arg4[%c0_5, %c0_6], %7 {strides = array<i32>} : memref<16x96xbf16, #tpu.memory_space<vmem>>, vector<16x96xbf16>,
    return
  }
  func.func @transform_0(%arg0: i32) -> (i32, i32) {
    %c0_i32 = arith.constant 0 : i32
    %c0_i32_0 = arith.constant 0 : i32
    return %arg0, %c0_i32 : i32, i32
  }
  func.func @transform_1(%arg0: i32) -> (i32, i32) {
    %c0_i32 = arith.constant 0 : i32
    %c0_i32_0 = arith.constant 0 : i32
    %c0_i32_1 = arith.constant 0 : i32
    return %c0_i32, %c0_i32_0 : i32, i32
  }
  func.func @transform_2(%arg0: i32) -> (i32, i32) {
    %c0_i32 = arith.constant 0 : i32
    %c0_i32_0 = arith.constant 0 : i32
    %c0_i32_1 = arith.constant 0 : i32
    return %c0_i32, %c0_i32_0 : i32, i32
  }
  func.func @transform_3(%arg0: i32) -> (i32, i32) {
    %c0_i32 = arith.constant 0 : i32
    %c0_i32_0 = arith.constant 0 : i32
    return %arg0, %c0_i32 : i32, i32
  }
}

</mosaic_0001>

<bundles_post_ra>
// kernel: tpu_custom_call.1
= control target key start
LH: loop header
LB: loop body
LE: loop exit
PB: predicated region body
PF: predicated region fallthrough
CT: control target
= control target key end

     0   :  { %8 = vsyncpa [#allocation3], 0  ;;  %s320_s0 = inlined_call_operand.hbm [shape: f32[16,32], index: 0, kind: input, shape index: {}]   ;;  %s321_s1 = inlined_call_operand.hbm [shape: bf16[32,96], index: 1, kind: input, shape index: {}]   ;;  %s322_s2 = inlined_call_operand.vmem [shape: f32[1,96], index: 2, kind: input, shape index: {}]   ;;  %s323_s3 = inlined_call_operand.hbm [shape: bf16[16,96], index: 3, kind: output, shape index: {}]  }
   0x1   :  { %9 = vsyncpa [#allocation6], 0 }
   0x2   :  { %10 = vsyncpa [#allocation4], 0  ;;  %s246_s12 = smov [#allocation2]   ;;  %s174_s16 = scalar_lea.hbm %s320_s0, 256 }
   0x3   :  { %s16_s13 = sshll.u32 %s246_s12, 4  ;;  %p175_p0 = scmp.ne.s32.totalorder %s320_s0, %s174_s16  ;;  %s17_s13 = int_to_ptr.vmem [resolvable:$true] %s16_s13 }
   0x4   :  { %p178_p1 = scmp.lt.u32.totalorder %s174_s16, %s320_s0 }
   0x6   :  { %p180_p2 = pnand %p178_p1, %p175_p0 }
   0x8   :  { %183 = shalt.err (!%p180_p2)
}
   0x9   :  { %s184_s21 = scalar_lea.vmem %s17_s13, 256  ;;  %p189_p4 = scmp.lt.s32.totalorder %s17_s13, %s17_s13 }
   0xa   :  { %p185_p3 = scmp.ne.s32.totalorder %s17_s13, %s184_s21  ;;  %p190_p5 = scmp.lt.s32.totalorder %s184_s21, %s184_s21 }
   0xc   :  { %p191_p6 = por %p190_p5, %p189_p4 }
   0xe   :  { %p192_p7 = pnand %p191_p6, %p185_p3 }
  0x10   :  { %195 = shalt.err (!%p192_p7)
}
  0x11   :  { %s247_s22 = smov 128   ;;  %s248_s23 = smov 8  }
  0x12   :  { %22 = dma.hbm_to_vmem [thread:$0]  %s320_s0, 256, %s17_s13, [#allocation3], %s247_s22, %s247_s22, %s248_s23  }
  0x13   :  { %s249_s26 = smov [#allocation5]   ;;  %s196_s30 = scalar_lea.hbm %s321_s1, 256 }
  0x14   :  { %s28_s27 = sshll.u32 %s249_s26, 4  ;;  %p197_p8 = scmp.ne.s32.totalorder %s321_s1, %s196_s30  ;;  %s29_s27 = int_to_ptr.vmem [resolvable:$true] %s28_s27 }
  0x15   :  { %p200_p9 = scmp.lt.u32.totalorder %s196_s30, %s321_s1 }
  0x17   :  { %p202_p10 = pnand %p200_p9, %p197_p8 }
  0x19   :  { %205 = shalt.err (!%p202_p10)
}
  0x1a   :  { %s206_s8 = scalar_lea.vmem %s29_s27, 256  ;;  %p211_p12 = scmp.lt.s32.totalorder %s29_s27, %s29_s27 }
  0x1b   :  { %p207_p11 = scmp.ne.s32.totalorder %s29_s27, %s206_s8  ;;  %p212_p13 = scmp.lt.s32.totalorder %s206_s8, %s206_s8 }
  0x1d   :  { %p213_p0 = por %p212_p13, %p211_p12 }
  0x1f   :  { %p214_p1 = pnand %p213_p0, %p207_p11 }
  0x21   :  { %217 = shalt.err (!%p214_p1)
}
  0x22   :  { %s250_s0 = smov 64   ;;  %s251_s9 = smov 4  }
  0x23   :  { %34 = dma.hbm_to_vmem [thread:$0]  %s321_s1, 256, %s29_s27, [#allocation6], %s250_s0, %s250_s0, %s251_s9  }
  0x24   :  { %240 = dma.done.wait [#allocation3], 256  }
  0x25   :  { %241 = vsyncadd [#allocation3], 4294967040 }
  0x26   :  { %242 = dma.done.wait [#allocation6], 256  }
  0x27   :  { %243 = vsyncadd [#allocation6], 4294967040  ;;  %v252_v0 = vmov 0.0   ;;  %vm253_vm0 = vmmov 0   ;;  %v172_v1 = vld [vmem:[#allocation5] sm:$0xff]   ;;  %v173_v2 = vld [vmem:[#allocation5 + $0x8] sm:$0xff]  }
  0x28   :  { %155 = vmatprep.subr.bf16.mxu0 %v252_v0  ;;  %159 = vmatprep.mubr.msk.bf16.mxu0 %vm253_vm0, %v252_v0  ;;  %v44_v3 = vld [vmem:[#allocation2] sm:$0xff]  ;;  %v45_v4 = vld [vmem:[#allocation2 + $0x8] sm:$0xff]  ;;  %vm70_vm1 = vcmask 261120   ;;  %vm123_vm2 = vcmask 781312   ;;  %s254_s13 = smov [#allocation7]  }
  0x29   :  { %156 = vmatpush3.bf16.msra.mxu0 %v172_v1  ;;  %v46_v5 = vpack.c.bf16 %v45_v4, %v44_v3  ;;  %v144_v6 = vld [vmem:[%s322_s2] ss:$0 sm:$0xff]  ;;  %s131_s14 = sshll.u32 %s254_s13, 4  ;;  %s132_s14 = int_to_ptr.vmem [resolvable:$true] %s131_s14 }
  0x2a   :  { %157 = vmatprep.subr.bf16.mxu0 %v252_v0  ;;  %s218_s15 = scalar_lea.vmem %s132_s14, 128  ;;  %p223_p3 = scmp.lt.s32.totalorder %s132_s14, %s132_s14 }
  0x2b   :  { %p219_p2 = scmp.ne.s32.totalorder %s132_s14, %s218_s15  ;;  %p224_p4 = scmp.lt.s32.totalorder %s218_s15, %s218_s15 }
  0x2d   :  { %158 = vmatpush3.bf16.msra.mxu0 %v173_v2  ;;  %p225_p5 = por %p224_p4, %p223_p3 }
  0x2f   :  { %p226_p6 = pnand %p225_p5, %p219_p2 }
  0x30   :  { %160 = vmatmul.mubr.msk.bf16.vlgmr.msra.gmra.mrb[0].mxu0 %vm70_vm1, %v46_v5 }
 0x103   :  { %v108_v7 = vpop.f32.mrb[0].mxu0 }
 0x104   :  { %v109_v8 = vadd.f32 %v144_v6, %v108_v7  ;;  %v161_v9 = vpop.f32.mrb[1].mxu0 }
 0x105   :  { %v111_v10 = vpop.f32.mrb[2].mxu0 }
 0x106   :  { %v150_v11 = vpack.c.bf16 %v109_v8, %v109_v8  ;;  %v112_v12 = vadd.f32 %v144_v6, %v111_v10  ;;  %v162_v13 = vpop.f32.mrb[3].mxu0 }
 0x108   :  { %v151_v14 = vpack.c.bf16 %v112_v12, %v112_v12  ;;  %124 = vst.msk [vmem:[#allocation7] sm:$0xf] %vm123_vm2, %v150_v11 }
 0x10a   :  { %125 = vst.msk [vmem:[#allocation7 + $0x4] sm:$0xf] %vm123_vm2, %v151_v14 }
 0x10b   :  { %229 = shalt.err (!%p226_p6)
}
 0x10c   :  { %s230_s17 = scalar_lea.hbm %s323_s3, 128 }
 0x10d   :  { %p231_p7 = scmp.ne.s32.totalorder %s323_s3, %s230_s17  ;;  %p234_p8 = scmp.lt.u32.totalorder %s230_s17, %s323_s3 }
 0x10f   :  { %p236_p9 = pnand %p234_p8, %p231_p7 }
 0x111   :  { %239 = shalt.err (!%p236_p9)
}
 0x112   :  { %137 = dma.vmem_to_hbm [thread:$0]  %s132_s14, 128, %s323_s3, [#allocation4], %s250_s0, %s250_s0, %s251_s9  }
 0x113   :  { %244 = dma.done.wait [#allocation4], 128  }
 0x114   :  { %245 = vsyncadd [#allocation4], 4294967168 }
 0x115   :  { %141 = vsyncpa [#allocation3], 1 }
 0x116   :  { %142 = vsyncpa [#allocation6], 1 }
 0x117   :  { %143 = vsyncpa [#allocation4], 1 }

</bundles_post_ra>
